<compile_context>
chip_gen: v7x
topology: tpu7x:2x2x1
jax: 0.10.0
libtpu: 0.0.40
codegen_flags: <defaults>
</compile_context>

<pallas_src>
import jax
import jax.numpy as jnp
from jax.experimental import pallas as pl
from jax.experimental.pallas import tpu as pltpu

PATCH_SIZE = 6
INPUT_FEATURES = PATCH_SIZE * PATCH_SIZE   # 36
OUTPUT_SIZE = 300


def _gmm_dense_kernel(x_ref, w_ref, const_ref, o_ref):
    """One batch-tile of the GMM log-density.

    x_ref:     (tb, D)      input tile
    w_ref:     (2D, C)      [ -0.5 * precision ; mu * precision ]^T
    const_ref: (1, C)       -0.5 * (sum mu^2 P + sum log sigma^2 + D log 2pi)
    o_ref:     (tb, C)      log-density output tile
    """
    x = x_ref[...]
    a = jnp.concatenate([x * x, x], axis=-1)            # (tb, 2D) — single MXU pass
    o_ref[...] = (jnp.dot(a, w_ref[...], preferred_element_type=jnp.float32)
                  + const_ref[...])


def _round_up(v, m):
    return ((v + m - 1) // m) * m


def _num_tensorcores():
    """2 TensorCores per chip on v7x; 1 on v5e/v6e.  Best-effort query."""
    try:
        kind = (jax.devices()[0].device_kind or "").lower()
    except Exception:
        return 1
    if "v7" in kind or "tpu7" in kind or "7x" in kind:
        return 2
    return 1


def _choose_tile_b(B, num_cores, max_rows_per_tile=2048):
    """Fewest tiles that keep each TensorCore busy, with minimal row padding."""
    n_tiles = max(-(-B // max_rows_per_tile),
                  num_cores if B >= 16 * num_cores else 1)
    if n_tiles == 1:
        return B                      # block == full array dim -> no padding at all
    return max(8, _round_up(-(-B // n_tiles), 8))


def gmm_dense_forward(x, mu, log_var, *, tile_b=None):
    """x: (B, D) float32; mu, log_var: (C, D) float32  ->  (B, C) float32."""
    x = x.astype(jnp.float32)
    mu = mu.astype(jnp.float32)
    log_var = log_var.astype(jnp.float32)

    B, D = x.shape
    C, _ = mu.shape

    # ---- host precompute: fold the -0.5 / cross scales into one fused W ----
    precision = jnp.exp(-log_var)                               # (C, D) = 1/sigma^2
    w = jnp.concatenate([-0.5 * precision, mu * precision], axis=1).T   # (2D, C)
    const = -0.5 * (jnp.sum(mu * mu * precision, axis=1)
                    + jnp.sum(log_var, axis=1)
                    + D * jnp.log(2.0 * jnp.pi)).reshape(1, C)  # (1, C)

    # ---- batch tiling (core-count aware, padding-minimal) -------------------
    if tile_b is None:
        tile_b = _choose_tile_b(B, _num_tensorcores())
    else:
        tile_b = min(int(tile_b), B)
        if tile_b < B:
            tile_b = max(8, _round_up(tile_b, 8))

    n_tiles = -(-B // tile_b)
    B_pad = n_tiles * tile_b
    x_in = x if B_pad == B else jnp.pad(x, ((0, B_pad - B), (0, 0)))

    out = pl.pallas_call(
        _gmm_dense_kernel,
        out_shape=jax.ShapeDtypeStruct((B_pad, C), jnp.float32),
        grid_spec=pltpu.PrefetchScalarGridSpec(
            num_scalar_prefetch=0,
            grid=(n_tiles,),
            in_specs=[
                pl.BlockSpec((tile_b, D), lambda i: (i, 0)),
                pl.BlockSpec((2 * D, C), lambda i: (0, 0)),
                pl.BlockSpec((1, C), lambda i: (0, 0)),
            ],
            out_specs=pl.BlockSpec((tile_b, C), lambda i: (i, 0)),
        ),
        compiler_params=pltpu.CompilerParams(
            dimension_semantics=("parallel",)),
    )(x_in, w.astype(jnp.float32), const.astype(jnp.float32))

    return out if B_pad == B else out[:B]


def reference_forward(x, mu, log_var):
    # Pure-JAX reference: full diagonal-Gaussian log-density.
    diff = x[:, None, :] - mu[None, :, :]                 # (B, C, D)
    maha = jnp.sum(diff * diff * jnp.exp(-log_var)[None], axis=-1)
    logdet = jnp.sum(log_var, axis=-1)[None]
    D = x.shape[-1]
    return -0.5 * (maha + logdet + D * jnp.log(2.0 * jnp.pi))


if __name__ == "__main__":
    key = jax.random.PRNGKey(0)
    k_x, k_mu, k_lv = jax.random.split(key, 3)

    B = 300                                 # small stand-in for test_batch_size
    D = INPUT_FEATURES                      # 36 (6x6 patch, flattened)
    C = OUTPUT_SIZE                         # 300

    x = jax.random.normal(k_x, (B, D), dtype=jnp.float32)
    mu = 0.1 * jax.random.normal(k_mu, (C, D), dtype=jnp.float32)
    log_var = 0.05 * jax.random.normal(k_lv, (C, D), dtype=jnp.float32)

    out = jax.block_until_ready(gmm_dense_forward(x, mu, log_var))

    ref = reference_forward(x, mu, log_var)
    assert out.shape == (B, C)
    assert jnp.allclose(out, ref, atol=1e-3, rtol=1e-3), "mismatch vs reference"

    print("KERNEL_OK")
</pallas_src>

<mosaic_0001>
module attributes {stable_mosaic.version = 11 : i64} {
  func.func @_gmm_dense_kernel(%arg0: i32, %arg1: memref<300x36xf32, #tpu.memory_space<vmem>>, %arg2: memref<72x300xf32, #tpu.memory_space<vmem>>, %arg3: memref<1x300xf32, #tpu.memory_space<vmem>>, %arg4: memref<300x300xf32, #tpu.memory_space<vmem>>) attributes {dimension_semantics = [#tpu.dimension_semantics<parallel>], iteration_bounds = array<i64: 1>, scalar_prefetch = 0 : i64, scratch_operands = 0 : i64, tpu.core_type = #tpu.core_type<tc>, window_params = [{transform_indices = @transform_0, window_bounds = array<i64: 300, 36>}, {pipeline_mode = #tpu.pipeline_mode<synchronous>, transform_indices = @transform_1, window_bounds = array<i64: 72, 300>}, {pipeline_mode = #tpu.pipeline_mode<synchronous>, transform_indices = @transform_2, window_bounds = array<i64: 1, 300>}, {transform_indices = @transform_3, window_bounds = array<i64: 300, 300>}]} {
    %c0 = arith.constant 0 : index
    %c0_0 = arith.constant 0 : index
    %0 = vector.load %arg1[%c0, %c0_0] : memref<300x36xf32, #tpu.memory_space<vmem>>, vector<300x36xf32>
    %1 = arith.mulf %0, %0 : vector<300x36xf32>
    %2 = tpu.concatenate %1, %0 in 1 : vector<300x36xf32>, vector<300x36xf32> -> vector<300x72xf32>
    %c0_1 = arith.constant 0 : index
    %c0_2 = arith.constant 0 : index
    %3 = vector.load %arg2[%c0_1, %c0_2] : memref<72x300xf32, #tpu.memory_space<vmem>>, vector<72x300xf32>
    %cst = arith.constant dense<0.000000e+00> : vector<300x300xf32>
    %4 = tpu.matmul %2, %3, %cst {dimension_numbers = #tpu.dot_dimension_numbers<[1], [0], [0], [1], [0, 0, 1, 1], [], []>} : vector<300x72xf32>, vector<72x300xf32>, vector<300x300xf32> -> vector<300x300xf32>
    %c0_3 = arith.constant 0 : index
    %c0_4 = arith.constant 0 : index
    %5 = vector.load %arg3[%c0_3, %c0_4] : memref<1x300xf32, #tpu.memory_space<vmem>>, vector<1x300xf32>
    %6 = vector.broadcast %5 : vector<1x300xf32> to vector<300x300xf32>
    %7 = arith.addf %4, %6 : vector<300x300xf32>
    %c0_5 = arith.constant 0 : index
    %c0_6 = arith.constant 0 : index
    %8 = vector.load %arg4[%c0_5, %c0_6] : memref<300x300xf32, #tpu.memory_space<vmem>>, vector<300x300xf32>
    tpu.vector_store %arg4[%c0_5, %c0_6], %7 {strides = array<i32>} : memref<300x300xf32, #tpu.memory_space<vmem>>, vector<300x300xf32>,
    return
  }
  func.func @transform_0(%arg0: i32) -> (i32, i32) {
    %c0_i32 = arith.constant 0 : i32
    %c0_i32_0 = arith.constant 0 : i32
    return %arg0, %c0_i32 : i32, i32
  }
  func.func @transform_1(%arg0: i32) -> (i32, i32) {
    %c0_i32 = arith.constant 0 : i32
    %c0_i32_0 = arith.constant 0 : i32
    %c0_i32_1 = arith.constant 0 : i32
    return %c0_i32, %c0_i32_0 : i32, i32
  }
  func.func @transform_2(%arg0: i32) -> (i32, i32) {
    %c0_i32 = arith.constant 0 : i32
    %c0_i32_0 = arith.constant 0 : i32
    %c0_i32_1 = arith.constant 0 : i32
    return %c0_i32, %c0_i32_0 : i32, i32
  }
  func.func @transform_3(%arg0: i32) -> (i32, i32) {
    %c0_i32 = arith.constant 0 : i32
    %c0_i32_0 = arith.constant 0 : i32
    return %arg0, %c0_i32 : i32, i32
  }
}

</mosaic_0001>

<bundles_post_ra>
// kernel: tpu_custom_call.1
= control target key start
LH: loop header
LB: loop body
LE: loop exit
PB: predicated region body
PF: predicated region fallthrough
CT: control target
= control target key end

     0   :  { %s1390_s16 = smov 36   ;;  %v1391_v4 = vmov 0.0   ;;  %s2236_s0 = inlined_call_operand.vmem [shape: f32[300,36], index: 0, kind: input, shape index: {}]   ;;  %s2237_s1 = inlined_call_operand.vmem [shape: f32[72,300], index: 1, kind: input, shape index: {}]   ;;  %s2238_s2 = inlined_call_operand.vmem [shape: f32[1,300], index: 2, kind: input, shape index: {}]   ;;  %s2239_s3 = inlined_call_operand.hbm [shape: f32[300,300], index: 3, kind: output, shape index: {}]  }
   0x1   :  { %v1418_v0 = vld [vmem:[%s2236_s0] sm:$0xff]  ;;  %v1423_v1 = vld [vmem:[%s2236_s0 + $0xe8] sm:$0xff]  ;;  %v1437_v3 = vld [vmem:[%s2236_s0 + $0x10] sm:$0xff]  ;;  %505 = vmatprep.mubr.f32.mxu0 %v1391_v4  ;;  %679 = vmatprep.mubr.f32.mxu1 %v1391_v4 }
   0x2   :  { %129 = vrot.lane.b32.xlu0 %v1418_v0, %s1390_s16  ;;  %187 = vrot.lane.b32.xlu1 %v1423_v1, %s1390_s16  ;;  %v1432_v2 = vld [vmem:[%s2236_s0 + $0x8] sm:$0xff]  ;;  %v1448_v5 = vld [vmem:[%s2236_s0 + $0xf0] sm:$0xff] }
   0x3   :  { %v1453_v6 = vld [vmem:[%s2236_s0 + $0x18] sm:$0xff]  ;;  %v1467_v8 = vld [vmem:[%s2236_s0 + $0x20] sm:$0xff]  ;;  %v1481_v10 = vld [vmem:[%s2236_s0 + $0x28] sm:$0xff] }
   0x4   :  { %v1462_v7 = vld [vmem:[%s2236_s0 + $0xf8] sm:$0xff]  ;;  %v1476_v9 = vld [vmem:[%s2236_s0 + $0x100] sm:$0xff]  ;;  %v283_v11 = vld [vmem:[%s2237_s1 + $0x8] sm:$0xff] }
   0x5   :  { %v286_v12 = vld [vmem:[%s2237_s1 + $0x20] sm:$0xff]  ;;  %v285_v15 = vld [vmem:[%s2237_s1 + $0x18] sm:$0xff]  ;;  %v292_v17 = vld [vmem:[%s2237_s1 + $0x50] sm:$0xff] }
   0x6   :  { %131 = vrot.lane.b32.xlu0 %v1432_v2, %s1390_s16  ;;  %133 = vrot.lane.b32.xlu1 %v1437_v3, %s1390_s16  ;;  %v282_v13 = vld [vmem:[%s2237_s1] sm:$0xff]  ;;  %v1319_v14 = vpack.c.bf16 %v286_v12, %v283_v11  ;;  %v289_v16 = vld [vmem:[%s2237_s1 + $0x38] sm:$0xff] }
   0x7   :  { %v1321_v18 = vpack.c.bf16 %v285_v15, %v282_v13  ;;  %v1323_v19 = vpack.c.bf16 %v292_v17, %v289_v16  ;;  %v288_v20 = vld [vmem:[%s2237_s1 + $0x30] sm:$0xff]  ;;  %v291_v21 = vld [vmem:[%s2237_s1 + $0x48] sm:$0xff]  ;;  %v298_v23 = vld [vmem:[%s2237_s1 + $0x80] sm:$0xff] }
   0x8   :  { %v295_v22 = vld [vmem:[%s2237_s1 + $0x68] sm:$0xff]  ;;  %v1525_v25 = vld [vmem:[%s2236_s0 + $0x30] sm:$0xff]  ;;  %1320 = vmatprep.subr.bf16.mxu0 %v1319_v14  ;;  %1351 = vmatprep.subr.bf16.mxu1 %v1319_v14  ;;  %v1325_v26 = vpack.c.bf16 %v291_v21, %v288_v20  ;;  %v294_v28 = vld [vmem:[%s2237_s1 + $0x60] sm:$0xff] }
   0x9   :  { %v1520_v24 = vld [vmem:[%s2236_s0 + $0x108] sm:$0xff]  ;;  %1322 = vmatpush1.bf16.msra.mxu0 %v1321_v18  ;;  %1356 = vmatpush1.bf16.msra.mxu1 %v1321_v18  ;;  %v1327_v27 = vpack.c.bf16 %v298_v23, %v295_v22  ;;  %v297_v29 = vld [vmem:[%s2237_s1 + $0x78] sm:$0xff]  ;;  %v304_v31 = vld [vmem:[%s2237_s1 + $0xb0] sm:$0xff] }
   0xa   :  { %189 = vrot.lane.b32.xlu0 %v1448_v5, %s1390_s16  ;;  %135 = vrot.lane.b32.xlu1 %v1453_v6, %s1390_s16  ;;  %v301_v30 = vld [vmem:[%s2237_s1 + $0x98] sm:$0xff]  ;;  %v1546_v32 = vld [vmem:[%s2236_s0 + $0x110] sm:$0xff]  ;;  %v1329_v34 = vpack.c.bf16 %v297_v29, %v294_v28 }
   0xb   :  { %1324 = vmatprep.subr.bf16.mxu0 %v1323_v19  ;;  %1352 = vmatprep.subr.bf16.mxu1 %v1323_v19  ;;  %v1551_v33 = vld [vmem:[%s2236_s0 + $0x38] sm:$0xff] }
   0xd   :  { %1326 = vmatpush1.bf16.msra.mxu0 %v1325_v26  ;;  %1357 = vmatpush1.bf16.msra.mxu1 %v1325_v26 }
   0xe   :  { %191 = vrot.lane.b32.xlu0 %v1462_v7, %s1390_s16  ;;  %137 = vrot.lane.b32.xlu1 %v1467_v8, %s1390_s16 }
  0x12   :  { %193 = vrot.lane.b32.xlu0 %v1476_v9, %s1390_s16  ;;  %139 = vrot.lane.b32.xlu1 %v1481_v10, %s1390_s16 }
  0x16   :  { %195 = vrot.lane.b32.xlu0 %v1520_v24, %s1390_s16  ;;  %141 = vrot.lane.b32.xlu1 %v1525_v25, %s1390_s16 }
  0x17   :  { %8 = vsyncpa [#allocation3], 0  ;;  %1328 = vmatprep.subr.bf16.mxu0 %v1327_v27  ;;  %1353 = vmatprep.subr.bf16.mxu1 %v1327_v27  ;;  %v1331_v35 = vpack.c.bf16 %v304_v31, %v301_v30  ;;  %v300_v36 = vld [vmem:[%s2237_s1 + $0x90] sm:$0xff]  ;;  %v303_v37 = vld [vmem:[%s2237_s1 + $0xa8] sm:$0xff]  ;;  %v53_v15 = vmul.f32 %v1418_v0, %v1418_v0  ;;  %v82_v16 = vmul.f32 %v1423_v1, %v1423_v1  ;;  %vm243_vm0 = vcmask 293888  }
  0x18   :  { %v1566_v38 = vld [vmem:[%s2236_s0 + $0x118] sm:$0xff]  ;;  %v1571_v39 = vld [vmem:[%s2236_s0 + $0x40] sm:$0xff]  ;;  %1330 = vmatpush1.bf16.msra.mxu0 %v1329_v34  ;;  %1358 = vmatpush1.bf16.msra.mxu1 %v1329_v34  ;;  %v1333_v40 = vpack.c.bf16 %v303_v37, %v300_v36  ;;  %v307_v41 = vld [vmem:[%s2237_s1 + $0xc8] sm:$0xff]  ;;  %vm326_vm1 = vcmask 588800   ;;  %v54_v22 = vmul.f32 %v1432_v2, %v1432_v2  ;;  %v55_v2 = vmul.f32 %v1437_v3, %v1437_v3 }
  0x19   :  { %1332 = vmatprep.subr.bf16.mxu0 %v1331_v35  ;;  %1354 = vmatprep.subr.bf16.mxu1 %v1331_v35  ;;  %v284_v42 = vld [vmem:[%s2237_s1 + $0x10] sm:$0xff]  ;;  %v287_v43 = vld [vmem:[%s2237_s1 + $0x28] sm:$0xff]  ;;  %v1589_v44 = vld [vmem:[%s2236_s0 + $0x120] sm:$0xff]  ;;  %v83_v30 = vmul.f32 %v1448_v5, %v1448_v5  ;;  %v56_v35 = vmul.f32 %v1453_v6, %v1453_v6  ;;  %v57_v6 = vmul.f32 %v1467_v8, %v1467_v8  ;;  %vm991_vm2 = vcmask 359424  }
  0x1a   :  { %197 = vrot.lane.b32.xlu0 %v1546_v32, %s1390_s16  ;;  %143 = vrot.lane.b32.xlu1 %v1551_v33, %s1390_s16  ;;  %v1594_v45 = vld [vmem:[%s2236_s0 + $0x48] sm:$0xff]  ;;  %v306_v46 = vld [vmem:[%s2237_s1 + $0xc0] sm:$0xff]  ;;  %v1599_v47 = vpack.c.bf16 %v287_v43, %v284_v42  ;;  %vm1103_vm3 = vcmask 355328  }
  0x1b   :  { %v1608_v48 = vld [vmem:[%s2236_s0 + $0x128] sm:$0xf]  ;;  %v1613_v49 = vld [vmem:[%s2236_s0 + $0x50] sm:$0xff]  ;;  %v1623_v50 = vld [vmem:[%s2236_s0 + $0x58] sm:$0xff] }
  0x1c   :  { %1334 = vmatpush1.bf16.msra.mxu0 %v1333_v40  ;;  %1359 = vmatpush1.bf16.msra.mxu1 %v1333_v40  ;;  %v1628_v51 = vld [vmem:[%s2236_s0 + $0x60] sm:$0xff]  ;;  %v1637_v52 = vld [vmem:[%s2236_s0 + $0x68] sm:$0xff]  ;;  %v1642_v53 = vld [vmem:[%s2236_s0 + $0x70] sm:$0xff]  ;;  %v84_v40 = vmul.f32 %v1462_v7, %v1462_v7 }
  0x1d   :  { %457 = vmatprep.subr.mxu0 %v307_v41  ;;  %1355 = vmatprep.subr.mxu1 %v307_v41  ;;  %v1651_v54 = vld [vmem:[%s2236_s0 + $0x78] sm:$0xff]  ;;  %v1656_v55 = vld [vmem:[%s2236_s0 + $0x80] sm:$0xff]  ;;  %v1665_v56 = vld [vmem:[%s2236_s0 + $0x88] sm:$0xff] }
  0x1e   :  { %199 = vrot.lane.b32.xlu0 %v1566_v38, %s1390_s16  ;;  %145 = vrot.lane.b32.xlu1 %v1571_v39, %s1390_s16  ;;  %v1670_v57 = vld [vmem:[%s2236_s0 + $0x90] sm:$0xff]  ;;  %v1679_v58 = vld [vmem:[%s2236_s0 + $0x98] sm:$0xff] }
  0x1f   :  { %v1684_v59 = vld [vmem:[%s2236_s0 + $0xa0] sm:$0xff]  ;;  %v1693_v60 = vld [vmem:[%s2236_s0 + $0xa8] sm:$0xff]  ;;  %v1698_v61 = vld [vmem:[%s2236_s0 + $0xb0] sm:$0xff] }
  0x20   :  { %458 = vmatpush1.msra.mxu0 %v306_v46  ;;  %1360 = vmatpush1.msra.mxu1 %v306_v46  ;;  %v1707_v62 = vld [vmem:[%s2236_s0 + $0xb8] sm:$0xff]  ;;  %v1712_v63 = vld [vmem:[%s2236_s0 + $0xc0] sm:$0xff]  ;;  %v1721_v11 = vld [vmem:[%s2236_s0 + $0xc8] sm:$0xff] }
  0x21   :  { %1336 = vmatprep.subr.bf16.mxu1 %v1599_v47  ;;  %v1726_v12 = vld [vmem:[%s2236_s0 + $0xd0] sm:$0xff]  ;;  %v1735_v13 = vld [vmem:[%s2236_s0 + $0xd8] sm:$0xff]  ;;  %v1740_v14 = vld [vmem:[%s2236_s0 + $0xe0] sm:$0xff] }
  0x22   :  { %201 = vrot.lane.b32.xlu0 %v1589_v44, %s1390_s16  ;;  %147 = vrot.lane.b32.xlu1 %v1594_v45, %s1390_s16  ;;  %v290_v17 = vld [vmem:[%s2237_s1 + $0x40] sm:$0xff]  ;;  %v293_v18 = vld [vmem:[%s2237_s1 + $0x58] sm:$0xff] }
  0x23   :  { %v1339_v21 = vpack.c.bf16 %v293_v18, %v290_v17  ;;  %v296_v23 = vld [vmem:[%s2237_s1 + $0x70] sm:$0xff]  ;;  %v299_v26 = vld [vmem:[%s2237_s1 + $0x88] sm:$0xff]  ;;  %v302_v3 = vld [vmem:[%s2237_s1 + $0xa0] sm:$0xff] }
  0x24   :  { %v1343_v29 = vpack.c.bf16 %v299_v26, %v296_v23  ;;  %v305_v34 = vld [vmem:[%s2237_s1 + $0xb8] sm:$0xff]  ;;  %v308_v8 = vld [vmem:[%s2237_s1 + $0xd0] sm:$0xff]  ;;  %v87_v23 = vmul.f32 %v1546_v32, %v1546_v32 }
  0x25   :  { %v1347_v42 = vpack.c.bf16 %v305_v34, %v302_v3 }
  0x26   :  { %203 = vrot.lane.b32.xlu0 %v1608_v48, %s1390_s16  ;;  %149 = vrot.lane.b32.xlu1 %v1613_v49, %s1390_s16 }
  0x2a   :  { %151 = vrot.lane.b32.xlu0 %v1623_v50, %s1390_s16  ;;  %153 = vrot.lane.b32.xlu1 %v1628_v51, %s1390_s16 }
  0x2e   :  { %155 = vrot.lane.b32.xlu0 %v1637_v52, %s1390_s16  ;;  %157 = vrot.lane.b32.xlu1 %v1642_v53, %s1390_s16 }
  0x32   :  { %159 = vrot.lane.b32.xlu0 %v1651_v54, %s1390_s16  ;;  %161 = vrot.lane.b32.xlu1 %v1656_v55, %s1390_s16 }
  0x36   :  { %163 = vrot.lane.b32.xlu0 %v1665_v56, %s1390_s16  ;;  %165 = vrot.lane.b32.xlu1 %v1670_v57, %s1390_s16 }
  0x3a   :  { %167 = vrot.lane.b32.xlu0 %v1679_v58, %s1390_s16  ;;  %169 = vrot.lane.b32.xlu1 %v1684_v59, %s1390_s16 }
  0x3e   :  { %171 = vrot.lane.b32.xlu0 %v1693_v60, %s1390_s16  ;;  %173 = vrot.lane.b32.xlu1 %v1698_v61, %s1390_s16 }
  0x42   :  { %175 = vrot.lane.b32.xlu0 %v1707_v62, %s1390_s16  ;;  %177 = vrot.lane.b32.xlu1 %v1712_v63, %s1390_s16 }
  0x46   :  { %179 = vrot.lane.b32.xlu0 %v1721_v11, %s1390_s16  ;;  %181 = vrot.lane.b32.xlu1 %v1726_v12, %s1390_s16 }
  0x4a   :  { %183 = vrot.lane.b32.xlu0 %v1735_v13, %s1390_s16  ;;  %185 = vrot.lane.b32.xlu1 %v1740_v14, %s1390_s16 }
  0x74   :  { %v130_v19 = vpop.permute.xlu0 %129  ;;  %v188_v20 = vpop.permute.xlu1 %187 }
  0x75   :  { %v1759_v0 = vsel %vm243_vm0, %v53_v15, %v130_v19  ;;  %v1762_v1 = vsel %vm243_vm0, %v82_v16, %v188_v20  ;;  %v58_v16 = vmul.f32 %v1481_v10, %v1481_v10  ;;  %v86_v19 = vmul.f32 %v1520_v24, %v1520_v24 }
  0x76   :  { %1121 = vmatmul.mubr.msk.f32.vlgmr.msra.gmra.mrb[0].mxu0 %vm326_vm1, %v1759_v0  ;;  %1150 = vmatmul.mubr.msk.f32.vlgmr.msra.gmra.mrb[0].mxu1 %vm326_vm1, %v1762_v1  ;;  %v59_v10 = vmul.f32 %v1525_v25, %v1525_v25  ;;  %v60_v25 = vmul.f32 %v1551_v33, %v1551_v33  ;;  %v61_v33 = vmul.f32 %v1571_v39, %v1571_v39 }
  0x77   :  { %511 = vmatprep.mubr.f32.mxu0 %v1391_v4  ;;  %1338 = vmatpush3.bf16.msra.mxu1 %v1599_v47  ;;  %v85_v47 = vmul.f32 %v1476_v9, %v1476_v9  ;;  %v62_v39 = vmul.f32 %v1594_v45, %v1594_v45  ;;  %v63_v45 = vmul.f32 %v1613_v49, %v1613_v49 }
  0x78   :  { %v132_v27 = vpop.permute.xlu0 %131  ;;  %v134_v28 = vpop.permute.xlu1 %133  ;;  %685 = vmatprep.mubr.f32.mxu1 %v1391_v4  ;;  %1340 = vmatprep.subr.bf16.mxu1 %v1339_v21 }
  0x79   :  { %v1782_v31 = vsel %vm243_vm0, %v54_v22, %v132_v27  ;;  %v1795_v36 = vsel %vm243_vm0, %v55_v2, %v134_v28  ;;  %v88_v28 = vmul.f32 %v1566_v38, %v1566_v38  ;;  %v89_v38 = vmul.f32 %v1589_v44, %v1589_v44 }
  0x7a   :  { %1122 = vmatmul.mubr.msk.f32.gmra.mrb[2].mxu0 %vm326_vm1, %v1782_v31  ;;  %v90_v44 = vmul.f32 %v1608_v48, %v1608_v48 }
  0x7b   :  { %517 = vmatprep.mubr.f32.mxu0 %v1391_v4  ;;  %1342 = vmatpush3.bf16.msra.mxu1 %v1339_v21 }
  0x7c   :  { %v190_v5 = vpop.permute.xlu0 %189  ;;  %v136_v37 = vpop.permute.xlu1 %135  ;;  %1344 = vmatprep.subr.bf16.mxu1 %v1343_v29 }
  0x7d   :  { %v1801_v41 = vsel %vm243_vm0, %v83_v30, %v190_v5  ;;  %v1810_v43 = vsel %vm243_vm0, %v56_v35, %v136_v37 }
  0x7e   :  { %1123 = vmatmul.mubr.msk.f32.gmra.mrb[4].mxu0 %vm326_vm1, %v1795_v36  ;;  %1151 = vmatmul.mubr.msk.f32.gmra.mrb[2].mxu1 %vm326_vm1, %v1801_v41 }
  0x7f   :  { %523 = vmatprep.mubr.f32.mxu0 %v1391_v4  ;;  %691 = vmatprep.mubr.f32.mxu1 %v1391_v4 }
  0x80   :  { %v192_v7 = vpop.permute.xlu0 %191  ;;  %v138_v46 = vpop.permute.xlu1 %137  ;;  %1346 = vmatpush3.bf16.msra.mxu1 %v1343_v29 }
  0x81   :  { %v1817_v15 = vsel %vm243_vm0, %v84_v40, %v192_v7  ;;  %1348 = vmatprep.subr.bf16.mxu1 %v1347_v42  ;;  %v1829_v17 = vsel %vm243_vm0, %v57_v6, %v138_v46 }
  0x82   :  { %1124 = vmatmul.mubr.msk.f32.gmra.mrb[6].mxu0 %vm326_vm1, %v1810_v43  ;;  %1152 = vmatmul.mubr.msk.f32.gmra.mrb[4].mxu1 %vm326_vm1, %v1817_v15 }
  0x83   :  { %529 = vmatprep.mubr.f32.mxu0 %v1391_v4  ;;  %697 = vmatprep.mubr.f32.mxu1 %v1391_v4 }
  0x84   :  { %v194_v9 = vpop.permute.xlu0 %193  ;;  %v140_v18 = vpop.permute.xlu1 %139  ;;  %1350 = vmatpush3.bf16.msra.mxu1 %v1347_v42 }
  0x85   :  { %v1836_v20 = vsel %vm243_vm0, %v85_v47, %v194_v9  ;;  %1260 = vmatprep.subr.mxu1 %v308_v8  ;;  %v1845_v21 = vsel %vm243_vm0, %v58_v16, %v140_v18  ;;  %v64_v47 = vmul.f32 %v1623_v50, %v1623_v50  ;;  %v65_v16 = vmul.f32 %v1628_v51, %v1628_v51 }
  0x86   :  { %1125 = vmatmul.mubr.msk.f32.gmra.mrb[8].mxu0 %vm326_vm1, %v1829_v17  ;;  %1153 = vmatmul.mubr.msk.f32.gmra.mrb[6].mxu1 %vm326_vm1, %v1836_v20  ;;  %v66_v9 = vmul.f32 %v1637_v52, %v1637_v52 }
  0x87   :  { %535 = vmatprep.mubr.f32.mxu0 %v1391_v4  ;;  %703 = vmatprep.mubr.f32.mxu1 %v1391_v4 }
  0x88   :  { %v196_v24 = vpop.permute.xlu0 %195  ;;  %v142_v22 = vpop.permute.xlu1 %141  ;;  %1261 = vmatpush3.msra.mxu1 %v308_v8 }
  0x89   :  { %v1852_v26 = vsel %vm243_vm0, %v86_v19, %v196_v24  ;;  %v250_v2 = vsel %vm243_vm0, %v59_v10, %v142_v22  ;;  %v69_v10 = vmul.f32 %v1656_v55, %v1656_v55  ;;  %v70_v22 = vmul.f32 %v1665_v56, %v1665_v56 }
  0x8a   :  { %1126 = vmatmul.mubr.msk.f32.gmra.mrb[10].mxu0 %vm326_vm1, %v1845_v21  ;;  %1154 = vmatmul.mubr.msk.f32.gmra.mrb[8].mxu1 %vm326_vm1, %v1852_v26 }
  0x8b   :  { %541 = vmatprep.mubr.f32.mxu0 %v1391_v4  ;;  %709 = vmatprep.mubr.f32.mxu1 %v1391_v4 }
  0x8c   :  { %v198_v27 = vpop.permute.xlu0 %197  ;;  %v144_v32 = vpop.permute.xlu1 %143 }
  0x8d   :  { %v1866_v29 = vsel %vm243_vm0, %v87_v23, %v198_v27  ;;  %v251_v30 = vsel %vm243_vm0, %v60_v25, %v144_v32  ;;  %v72_v32 = vmul.f32 %v1679_v58, %v1679_v58 }
  0x8e   :  { %1127 = vmatmul.mubr.msk.f32.gmra.mrb[12].mxu0 %vm326_vm1, %v250_v2  ;;  %1155 = vmatmul.mubr.msk.f32.gmra.mrb[10].mxu1 %vm326_vm1, %v1866_v29 }
  0x8f   :  { %547 = vmatprep.mubr.f32.mxu0 %v1391_v4  ;;  %715 = vmatprep.mubr.f32.mxu1 %v1391_v4 }
  0x90   :  { %v200_v3 = vpop.permute.xlu0 %199  ;;  %v146_v34 = vpop.permute.xlu1 %145 }
  0x91   :  { %v1879_v35 = vsel %vm243_vm0, %v88_v28, %v200_v3  ;;  %v252_v5 = vsel %vm243_vm0, %v61_v33, %v146_v34  ;;  %v73_v33 = vmul.f32 %v1684_v59, %v1684_v59  ;;  %v75_v3 = vmul.f32 %v1698_v61, %v1698_v61 }
  0x92   :  { %1128 = vmatmul.mubr.msk.f32.gmra.mrb[14].mxu0 %vm326_vm1, %v251_v30  ;;  %1156 = vmatmul.mubr.msk.f32.gmra.mrb[12].mxu1 %vm326_vm1, %v1879_v35  ;;  %v77_v61 = vmul.f32 %v1712_v63, %v1712_v63  ;;  %v79_v63 = vmul.f32 %v1726_v12, %v1726_v12 }
  0x93   :  { %553 = vmatprep.mubr.f32.mxu0 %v1391_v4  ;;  %721 = vmatprep.mubr.f32.mxu1 %v1391_v4 }
  0x94   :  { %v202_v37 = vpop.permute.xlu0 %201  ;;  %v148_v40 = vpop.permute.xlu1 %147 }
  0x95   :  { %v1892_v42 = vsel %vm243_vm0, %v89_v38, %v202_v37  ;;  %v253_v6 = vsel %vm243_vm0, %v62_v39, %v148_v40  ;;  %v78_v40 = vmul.f32 %v1721_v11, %v1721_v11 }
  0x96   :  { %1129 = vmatmul.mubr.msk.f32.gmra.mrb[16].mxu0 %vm326_vm1, %v252_v5  ;;  %1157 = vmatmul.mubr.msk.f32.gmra.mrb[14].mxu1 %vm326_vm1, %v1892_v42 }
  0x97   :  { %559 = vmatprep.mubr.f32.mxu0 %v1391_v4  ;;  %727 = vmatprep.mubr.f32.mxu1 %v1391_v4 }
  0x98   :  { %v204_v7 = vpop.permute.xlu0 %203  ;;  %v150_v46 = vpop.permute.xlu1 %149 }
  0x99   :  { %v1903_v48 = vsel %vm243_vm0, %v90_v44, %v204_v7  ;;  %v254_v49 = vsel %vm243_vm0, %v63_v45, %v150_v46  ;;  %v81_v7 = vmul.f32 %v1740_v14, %v1740_v14  ;;  %v311_v14 = vlaneseq }
  0x9a   :  { %1130 = vmatmul.mubr.msk.f32.gmra.mrb[18].mxu0 %vm326_vm1, %v253_v6  ;;  %1158 = vmatmul.mubr.msk.f32.gmra.mrb[16].mxu1 %vm326_vm1, %v1903_v48 }
  0x9b   :  { %1262 = vmatprep.mubr.msk.f32.mxu1 %vm326_vm1, %v1759_v0  ;;  %565 = vmatprep.mubr.f32.mxu0 %v1391_v4 }
  0x9c   :  { %v152_v8 = vpop.permute.xlu0 %151  ;;  %v154_v0 = vpop.permute.xlu1 %153 }
  0x9d   :  { %v255_v50 = vsel %vm243_vm0, %v64_v47, %v152_v8  ;;  %v256_v51 = vsel %vm243_vm0, %v65_v16, %v154_v0 }
  0x9e   :  { %1131 = vmatmul.mubr.msk.f32.gmra.mrb[20].mxu0 %vm326_vm1, %v254_v49  ;;  %1263 = vmatmul.mubr.msk.f32.vlgmr.msra.gmra.mrb[18].mxu1 %vm326_vm1, %v1782_v31 }
  0x9f   :  { %1265 = vmatprep.mubr.msk.f32.mxu1 %vm326_vm1, %v1795_v36  ;;  %571 = vmatprep.mubr.f32.mxu0 %v1391_v4  ;;  %v67_v36 = vmul.f32 %v1642_v53, %v1642_v53 }
  0xa0   :  { %v156_v31 = vpop.permute.xlu0 %155 }
  0xa1   :  { %v257_v52 = vsel %vm243_vm0, %v66_v9, %v156_v31 }
  0xa2   :  { %1132 = vmatmul.mubr.msk.f32.gmra.mrb[22].mxu0 %vm326_vm1, %v255_v50  ;;  %1266 = vmatmul.mubr.msk.f32.gmra.mrb[20].mxu1 %vm326_vm1, %v1810_v43  ;;  %v158_v43 = vpop.permute.xlu1 %157 }
  0xa3   :  { %1268 = vmatprep.mubr.msk.f32.mxu1 %vm326_vm1, %v1829_v17  ;;  %577 = vmatprep.mubr.f32.mxu0 %v1391_v4  ;;  %v68_v17 = vmul.f32 %v1651_v54, %v1651_v54  ;;  %v258_v18 = vsel %vm243_vm0, %v67_v36, %v158_v43 }
  0xa4   :  { %v160_v53 = vpop.permute.xlu0 %159 }
  0xa6   :  { %1133 = vmatmul.mubr.msk.f32.gmra.mrb[24].mxu0 %vm326_vm1, %v256_v51  ;;  %1269 = vmatmul.mubr.msk.f32.gmra.mrb[22].mxu1 %vm326_vm1, %v1845_v21  ;;  %v162_v19 = vpop.permute.xlu1 %161  ;;  %v259_v21 = vsel %vm243_vm0, %v68_v17, %v160_v53 }
  0xa7   :  { %1271 = vmatprep.mubr.msk.f32.mxu1 %vm326_vm1, %v250_v2  ;;  %583 = vmatprep.mubr.f32.mxu0 %v1391_v4  ;;  %v260_v23 = vsel %vm243_vm0, %v69_v10, %v162_v19  ;;  %v71_v2 = vmul.f32 %v1670_v57, %v1670_v57 }
  0xa8   :  { %v164_v54 = vpop.permute.xlu0 %163 }
  0xa9   :  { %v261_v27 = vsel %vm243_vm0, %v70_v22, %v164_v54 }
  0xaa   :  { %1134 = vmatmul.mubr.msk.f32.gmra.mrb[26].mxu0 %vm326_vm1, %v257_v52  ;;  %1272 = vmatmul.mubr.msk.f32.gmra.mrb[24].mxu1 %vm326_vm1, %v251_v30  ;;  %v166_v24 = vpop.permute.xlu1 %165  ;;  %v74_v30 = vmul.f32 %v1693_v60, %v1693_v60  ;;  %v76_v60 = vmul.f32 %v1707_v62, %v1707_v62 }
  0xab   :  { %1274 = vmatprep.mubr.msk.f32.mxu1 %vm326_vm1, %v252_v5  ;;  %589 = vmatprep.mubr.f32.mxu0 %v1391_v4  ;;  %v262_v28 = vsel %vm243_vm0, %v71_v2, %v166_v24 }
  0xac   :  { %v168_v55 = vpop.permute.xlu0 %167 }
  0xad   :  { %v263_v58 = vsel %vm243_vm0, %v72_v32, %v168_v55 }
  0xae   :  { %1135 = vmatmul.mubr.msk.f32.gmra.mrb[28].mxu0 %vm326_vm1, %v258_v18  ;;  %1275 = vmatmul.mubr.msk.f32.gmra.mrb[26].mxu1 %vm326_vm1, %v253_v6  ;;  %v170_v25 = vpop.permute.xlu1 %169  ;;  %v80_v6 = vmul.f32 %v1735_v13, %v1735_v13 }
  0xaf   :  { %1277 = vmatprep.mubr.msk.f32.mxu1 %vm326_vm1, %v254_v49  ;;  %595 = vmatprep.mubr.f32.mxu0 %v1391_v4  ;;  %v264_v34 = vsel %vm243_vm0, %v73_v33, %v170_v25 }
  0xb0   :  { %v172_v56 = vpop.permute.xlu0 %171 }
  0xb1   :  { %v265_v39 = vsel %vm243_vm0, %v74_v30, %v172_v56 }
  0xb2   :  { %1136 = vmatmul.mubr.msk.f32.gmra.mrb[30].mxu0 %vm326_vm1, %v259_v21  ;;  %1278 = vmatmul.mubr.msk.f32.gmra.mrb[28].mxu1 %vm326_vm1, %v255_v50  ;;  %v174_v57 = vpop.permute.xlu1 %173 }
  0xb3   :  { %1280 = vmatprep.mubr.msk.f32.mxu1 %vm326_vm1, %v256_v51  ;;  %601 = vmatprep.mubr.f32.mxu0 %v1391_v4  ;;  %v266_v5 = vsel %vm243_vm0, %v75_v3, %v174_v57 }
  0xb4   :  { %v176_v38 = vpop.permute.xlu0 %175 }
  0xb5   :  { %v267_v62 = vsel %vm243_vm0, %v76_v60, %v176_v38 }
  0xb6   :  { %1137 = vmatmul.mubr.msk.f32.gmra.mrb[32].mxu0 %vm326_vm1, %v260_v23  ;;  %1281 = vmatmul.mubr.msk.f32.gmra.mrb[30].mxu1 %vm326_vm1, %v257_v52  ;;  %v178_v59 = vpop.permute.xlu1 %177 }
  0xb7   :  { %1283 = vmatprep.mubr.msk.f32.mxu1 %vm326_vm1, %v258_v18  ;;  %607 = vmatprep.mubr.f32.mxu0 %v1391_v4  ;;  %v268_v45 = vsel %vm243_vm0, %v77_v61, %v178_v59 }
  0xb8   :  { %v180_v37 = vpop.permute.xlu0 %179 }
  0xb9   :  { %v269_v11 = vsel %vm243_vm0, %v78_v40, %v180_v37 }
  0xba   :  { %1138 = vmatmul.mubr.msk.f32.gmra.mrb[34].mxu0 %vm326_vm1, %v261_v27  ;;  %1284 = vmatmul.mubr.msk.f32.gmra.mrb[32].mxu1 %vm326_vm1, %v259_v21  ;;  %v182_v44 = vpop.permute.xlu1 %181 }
  0xbb   :  { %1286 = vmatprep.mubr.msk.f32.mxu1 %vm326_vm1, %v260_v23  ;;  %613 = vmatprep.mubr.f32.mxu0 %v1391_v4  ;;  %v270_v12 = vsel %vm243_vm0, %v79_v63, %v182_v44 }
  0xbc   :  { %v184_v46 = vpop.permute.xlu0 %183 }
  0xbd   :  { %v271_v49 = vsel %vm243_vm0, %v80_v6, %v184_v46 }
  0xbe   :  { %1139 = vmatmul.mubr.msk.f32.gmra.mrb[36].mxu0 %vm326_vm1, %v262_v28  ;;  %1287 = vmatmul.mubr.msk.f32.gmra.mrb[34].mxu1 %vm326_vm1, %v261_v27  ;;  %v186_v47 = vpop.permute.xlu1 %185 }
  0xbf   :  { %1289 = vmatprep.mubr.msk.f32.mxu1 %vm326_vm1, %v262_v28  ;;  %619 = vmatprep.mubr.f32.mxu0 %v1391_v4  ;;  %v272_v13 = vsel %vm243_vm0, %v81_v7, %v186_v47 }
  0xc2   :  { %1140 = vmatmul.mubr.msk.f32.gmra.mrb[38].mxu0 %vm326_vm1, %v263_v58  ;;  %1290 = vmatmul.mubr.msk.f32.gmra.mrb[36].mxu1 %vm326_vm1, %v263_v58 }
  0xc3   :  { %625 = vmatprep.mubr.f32.mxu0 %v1391_v4  ;;  %1292 = vmatprep.mubr.msk.f32.mxu1 %vm326_vm1, %v264_v34 }
  0xc6   :  { %1141 = vmatmul.mubr.msk.f32.gmra.mrb[40].mxu0 %vm326_vm1, %v264_v34  ;;  %1293 = vmatmul.mubr.msk.f32.gmra.mrb[38].mxu1 %vm326_vm1, %v265_v39 }
  0xc7   :  { %631 = vmatprep.mubr.f32.mxu0 %v1391_v4  ;;  %1295 = vmatprep.mubr.msk.f32.mxu1 %vm326_vm1, %v266_v5 }
  0xca   :  { %1142 = vmatmul.mubr.msk.f32.gmra.mrb[42].mxu0 %vm326_vm1, %v265_v39  ;;  %1296 = vmatmul.mubr.msk.f32.gmra.mrb[40].mxu1 %vm326_vm1, %v267_v62 }
  0xcb   :  { %637 = vmatprep.mubr.f32.mxu0 %v1391_v4  ;;  %1298 = vmatprep.mubr.msk.f32.mxu1 %vm326_vm1, %v268_v45 }
  0xce   :  { %1143 = vmatmul.mubr.msk.f32.gmra.mrb[44].mxu0 %vm326_vm1, %v266_v5  ;;  %1299 = vmatmul.mubr.msk.f32.gmra.mrb[42].mxu1 %vm326_vm1, %v269_v11 }
  0xcf   :  { %643 = vmatprep.mubr.f32.mxu0 %v1391_v4  ;;  %1301 = vmatprep.mubr.msk.f32.mxu1 %vm326_vm1, %v270_v12 }
  0xd2   :  { %1144 = vmatmul.mubr.msk.f32.gmra.mrb[46].mxu0 %vm326_vm1, %v267_v62  ;;  %1302 = vmatmul.mubr.msk.f32.gmra.mrb[44].mxu1 %vm326_vm1, %v271_v49 }
  0xd3   :  { %649 = vmatprep.mubr.f32.mxu0 %v1391_v4  ;;  %1304 = vmatprep.mubr.msk.f32.mxu1 %vm326_vm1, %v272_v13 }
  0xd6   :  { %1145 = vmatmul.mubr.msk.f32.gmra.mrb[48].mxu0 %vm326_vm1, %v268_v45  ;;  %1305 = vmatmul.mubr.msk.f32.gmra.mrb[46].mxu1 %vm326_vm1, %v1762_v1  ;;  %v2054_v1 = vshrl.u32 %v311_v14, 7 }
  0xd7   :  { %1307 = vmatprep.mubr.msk.f32.mxu1 %vm326_vm1, %v1801_v41  ;;  %655 = vmatprep.mubr.f32.mxu0 %v1391_v4 }
  0xd8   :  { %v313_v41 = vsub.s32 0, %v2054_v1 }
  0xda   :  { %1146 = vmatmul.mubr.msk.f32.gmra.mrb[50].mxu0 %vm326_vm1, %v269_v11  ;;  %1308 = vmatmul.mubr.msk.f32.gmra.mrb[48].mxu1 %vm326_vm1, %v1817_v15  ;;  %v2060_v15 = vld [vmem:[%s2238_s2] sm:$0x7]  ;;  %s1392_s2 = smov [#allocation2]  }
  0xdb   :  { %1310 = vmatprep.mubr.msk.f32.mxu1 %vm326_vm1, %v1836_v20  ;;  %661 = vmatprep.mubr.f32.mxu0 %v1391_v4  ;;  %v317_v20 = vsub.s32 1, %v2054_v1  ;;  %s1110_s11 = sshll.u32 %s1392_s2, 4  ;;  %s1111_s11 = int_to_ptr.vmem [resolvable:$true] %s1110_s11 }
  0xdc   :  { %s1366_s12 = scalar_lea.vmem %s1111_s11, 14592  ;;  %p1371_p1 = scmp.lt.s32.totalorder %s1111_s11, %s1111_s11 }
  0xdd   :  { %p1367_p0 = scmp.ne.s32.totalorder %s1111_s11, %s1366_s12  ;;  %p1372_p2 = scmp.lt.s32.totalorder %s1366_s12, %s1366_s12 }
  0xde   :  { %1147 = vmatmul.mubr.msk.f32.gmra.mrb[52].mxu0 %vm326_vm1, %v270_v12  ;;  %1311 = vmatmul.mubr.msk.f32.gmra.mrb[50].mxu1 %vm326_vm1, %v1852_v26  ;;  %v2064_v26 = vrot.slane %v2060_v15, %v313_v41 }
  0xdf   :  { %1313 = vmatprep.mubr.msk.f32.mxu1 %vm326_vm1, %v1866_v29  ;;  %667 = vmatprep.mubr.f32.mxu0 %v1391_v4  ;;  %p1373_p3 = por %p1372_p2, %p1371_p1 }
  0xe1   :  { %p1374_p4 = pnand %p1373_p3, %p1367_p0 }
  0xe2   :  { %1148 = vmatmul.mubr.msk.f32.gmra.mrb[54].mxu0 %vm326_vm1, %v271_v49  ;;  %1314 = vmatmul.mubr.msk.f32.gmra.mrb[52].mxu1 %vm326_vm1, %v1879_v35 }
  0xe3   :  { %1316 = vmatprep.mubr.msk.f32.mxu1 %vm326_vm1, %v1892_v42  ;;  %673 = vmatprep.mubr.f32.mxu0 %v1391_v4  ;;  %v2067_v4 = vrot.slane %v2060_v15, %v317_v20 }
  0xe6   :  { %1149 = vmatmul.mubr.msk.f32.gmra.mrb[56].mxu0 %vm326_vm1, %v272_v13  ;;  %1317 = vmatmul.mubr.msk.f32.gmra.mrb[54].mxu1 %vm326_vm1, %v1903_v48 }
 0x149   :  { %v507_v29 = vpop.f32.mrb[0].mxu0  ;;  %v681_v35 = vpop.f32.mrb[0].mxu1 }
 0x14a   :  { %v508_v42 = vadd.f32 %v507_v29, %v2064_v26  ;;  %v509_v48 = vpop.f32.mrb[1].mxu0  ;;  %v682_v8 = vadd.f32 %v681_v35, %v2064_v26  ;;  %v683_v16 = vpop.f32.mrb[1].mxu1 }
 0x14b   :  { %v510_v50 = vadd.f32 %v509_v48, %v2067_v4  ;;  %v684_v0 = vadd.f32 %v683_v16, %v2067_v4 }
 0x14c   :  { %989 = vst [vmem:[#allocation2] sm:$0xff] %v508_v42  ;;  %1077 = vst [vmem:[#allocation2 + $0x2b8] sm:$0xff] %v682_v8 }
 0x14d   :  { %990 = vst [vmem:[#allocation2 + $0x8] sm:$0xff] %v510_v50  ;;  %v513_v9 = vpop.f32.mrb[2].mxu0  ;;  %1078 = vst [vmem:[#allocation2 + $0x2c0] sm:$0xff] %v684_v0  ;;  %v321_v50 = vsub.s32 2, %v2054_v1 }
 0x14e   :  { %v514_v51 = vadd.f32 %v513_v9, %v2064_v26  ;;  %v515_v31 = vpop.f32.mrb[3].mxu0 }
 0x14f   :  { %v516_v36 = vadd.f32 %v515_v31, %v2067_v4 }
 0x150   :  { %993 = vst [vmem:[#allocation2 + $0x18] sm:$0xff] %v514_v51 }
 0x151   :  { %994 = vst [vmem:[#allocation2 + $0x20] sm:$0xff] %v516_v36  ;;  %v519_v52 = vpop.f32.mrb[4].mxu0  ;;  %v687_v43 = vpop.f32.mrb[2].mxu1 }
 0x152   :  { %v520_v17 = vadd.f32 %v519_v52, %v2064_v26  ;;  %v688_v18 = vadd.f32 %v687_v43, %v2064_v26  ;;  %v521_v53 = vpop.f32.mrb[5].mxu0  ;;  %v689_v19 = vpop.f32.mrb[3].mxu1 }
 0x153   :  { %v522_v10 = vadd.f32 %v521_v53, %v2067_v4  ;;  %v690_v21 = vadd.f32 %v689_v19, %v2067_v4 }
 0x154   :  { %996 = vst [vmem:[#allocation2 + $0x30] sm:$0xff] %v520_v17  ;;  %1080 = vst [vmem:[#allocation2 + $0x2d0] sm:$0xff] %v688_v18  ;;  %v2107_v18 = vrot.slane %v2060_v15, %v321_v50 }
 0x155   :  { %997 = vst [vmem:[#allocation2 + $0x38] sm:$0xff] %v522_v10  ;;  %1081 = vst [vmem:[#allocation2 + $0x2d8] sm:$0xff] %v690_v21  ;;  %v525_v54 = vpop.f32.mrb[6].mxu0  ;;  %v693_v24 = vpop.f32.mrb[4].mxu1 }
 0x156   :  { %v526_v22 = vadd.f32 %v525_v54, %v2064_v26  ;;  %v694_v23 = vadd.f32 %v693_v24, %v2064_v26  ;;  %v527_v55 = vpop.f32.mrb[7].mxu0  ;;  %v695_v25 = vpop.f32.mrb[5].mxu1 }
 0x157   :  { %v528_v2 = vadd.f32 %v527_v55, %v2067_v4  ;;  %v696_v27 = vadd.f32 %v695_v25, %v2067_v4 }
 0x158   :  { %999 = vst [vmem:[#allocation2 + $0x48] sm:$0xff] %v526_v22  ;;  %1083 = vst [vmem:[#allocation2 + $0x2e8] sm:$0xff] %v694_v23 }
 0x159   :  { %1000 = vst [vmem:[#allocation2 + $0x50] sm:$0xff] %v528_v2  ;;  %1084 = vst [vmem:[#allocation2 + $0x2f0] sm:$0xff] %v696_v27  ;;  %v531_v56 = vpop.f32.mrb[8].mxu0  ;;  %v699_v32 = vpop.f32.mrb[6].mxu1 }
 0x15a   :  { %v532_v28 = vadd.f32 %v531_v56, %v2064_v26  ;;  %v700_v57 = vadd.f32 %v699_v32, %v2064_v26  ;;  %v533_v33 = vpop.f32.mrb[9].mxu0  ;;  %v701_v30 = vpop.f32.mrb[7].mxu1 }
 0x15b   :  { %v534_v58 = vadd.f32 %v533_v33, %v2067_v4  ;;  %v702_v3 = vadd.f32 %v701_v30, %v2067_v4 }
 0x15c   :  { %1002 = vst [vmem:[#allocation2 + $0x60] sm:$0xff] %v532_v28  ;;  %1086 = vst [vmem:[#allocation2 + $0x300] sm:$0xff] %v700_v57 }
 0x15d   :  { %1003 = vst [vmem:[#allocation2 + $0x68] sm:$0xff] %v534_v58  ;;  %1087 = vst [vmem:[#allocation2 + $0x308] sm:$0xff] %v702_v3  ;;  %v537_v34 = vpop.f32.mrb[10].mxu0  ;;  %v705_v38 = vpop.f32.mrb[8].mxu1 }
 0x15e   :  { %v538_v59 = vadd.f32 %v537_v34, %v2064_v26  ;;  %v706_v60 = vadd.f32 %v705_v38, %v2064_v26  ;;  %v539_v39 = vpop.f32.mrb[11].mxu0  ;;  %v707_v61 = vpop.f32.mrb[9].mxu1 }
 0x15f   :  { %v540_v5 = vadd.f32 %v539_v39, %v2067_v4  ;;  %v708_v37 = vadd.f32 %v707_v61, %v2067_v4 }
 0x160   :  { %1005 = vst [vmem:[#allocation2 + $0x78] sm:$0xff] %v538_v59  ;;  %1089 = vst [vmem:[#allocation2 + $0x318] sm:$0xff] %v706_v60 }
 0x161   :  { %1006 = vst [vmem:[#allocation2 + $0x80] sm:$0xff] %v540_v5  ;;  %1090 = vst [vmem:[#allocation2 + $0x320] sm:$0xff] %v708_v37  ;;  %v543_v40 = vpop.f32.mrb[12].mxu0  ;;  %v711_v62 = vpop.f32.mrb[10].mxu1 }
 0x162   :  { %v544_v44 = vadd.f32 %v543_v40, %v2064_v26  ;;  %v712_v63 = vadd.f32 %v711_v62, %v2064_v26  ;;  %v545_v45 = vpop.f32.mrb[13].mxu0  ;;  %v713_v6 = vpop.f32.mrb[11].mxu1 }
 0x163   :  { %v546_v11 = vadd.f32 %v545_v45, %v2067_v4  ;;  %v714_v7 = vadd.f32 %v713_v6, %v2067_v4 }
 0x164   :  { %1008 = vst [vmem:[#allocation2 + $0x90] sm:$0xff] %v544_v44  ;;  %1092 = vst [vmem:[#allocation2 + $0x330] sm:$0xff] %v712_v63 }
 0x165   :  { %1009 = vst [vmem:[#allocation2 + $0x98] sm:$0xff] %v546_v11  ;;  %1093 = vst [vmem:[#allocation2 + $0x338] sm:$0xff] %v714_v7  ;;  %v549_v12 = vpop.f32.mrb[14].mxu0  ;;  %v717_v46 = vpop.f32.mrb[12].mxu1 }
 0x166   :  { %v550_v47 = vadd.f32 %v549_v12, %v2064_v26  ;;  %v718_v49 = vadd.f32 %v717_v46, %v2064_v26  ;;  %v551_v13 = vpop.f32.mrb[15].mxu0  ;;  %v719_v14 = vpop.f32.mrb[13].mxu1 }
 0x167   :  { %v552_v41 = vadd.f32 %v551_v13, %v2067_v4  ;;  %v720_v20 = vadd.f32 %v719_v14, %v2067_v4 }
 0x168   :  { %1011 = vst [vmem:[#allocation2 + $0xa8] sm:$0xff] %v550_v47  ;;  %1095 = vst [vmem:[#allocation2 + $0x348] sm:$0xff] %v718_v49 }
 0x169   :  { %1012 = vst [vmem:[#allocation2 + $0xb0] sm:$0xff] %v552_v41  ;;  %1096 = vst [vmem:[#allocation2 + $0x350] sm:$0xff] %v720_v20  ;;  %v555_v29 = vpop.f32.mrb[16].mxu0  ;;  %v723_v35 = vpop.f32.mrb[14].mxu1 }
 0x16a   :  { %v556_v42 = vadd.f32 %v555_v29, %v2064_v26  ;;  %v724_v48 = vadd.f32 %v723_v35, %v2064_v26  ;;  %v557_v8 = vpop.f32.mrb[17].mxu0  ;;  %v725_v16 = vpop.f32.mrb[15].mxu1 }
 0x16b   :  { %v558_v0 = vadd.f32 %v557_v8, %v2067_v4  ;;  %v726_v9 = vadd.f32 %v725_v16, %v2067_v4 }
 0x16c   :  { %1014 = vst [vmem:[#allocation2 + $0xc0] sm:$0xff] %v556_v42  ;;  %1098 = vst [vmem:[#allocation2 + $0x360] sm:$0xff] %v724_v48 }
 0x16d   :  { %1015 = vst [vmem:[#allocation2 + $0xc8] sm:$0xff] %v558_v0  ;;  %1099 = vst [vmem:[#allocation2 + $0x368] sm:$0xff] %v726_v9  ;;  %v561_v51 = vpop.f32.mrb[18].mxu0  ;;  %v729_v31 = vpop.f32.mrb[16].mxu1 }
 0x16e   :  { %v562_v36 = vadd.f32 %v561_v51, %v2064_v26  ;;  %v730_v52 = vadd.f32 %v729_v31, %v2064_v26  ;;  %v563_v43 = vpop.f32.mrb[19].mxu0  ;;  %v731_v17 = vpop.f32.mrb[17].mxu1 }
 0x16f   :  { %v564_v1 = vadd.f32 %v563_v43, %v2067_v4  ;;  %v732_v53 = vadd.f32 %v731_v17, %v2067_v4 }
 0x170   :  { %1017 = vst [vmem:[#allocation2 + $0xd8] sm:$0xff] %v562_v36  ;;  %1101 = vst [vmem:[#allocation2 + $0x378] sm:$0xf] %v730_v52 }
 0x171   :  { %1018 = vst [vmem:[#allocation2 + $0xe0] sm:$0xff] %v564_v1  ;;  %1102 = vst [vmem:[#allocation2 + $0x380] sm:$0xf] %v732_v53  ;;  %v567_v19 = vpop.f32.mrb[20].mxu0  ;;  %v1264_v10 = vpop.f32.mrb[18].mxu1 }
 0x172   :  { %v568_v21 = vadd.f32 %v567_v19, %v2064_v26  ;;  %v806_v54 = vadd.f32 %v1264_v10, %v2107_v18  ;;  %v569_v24 = vpop.f32.mrb[21].mxu0  ;;  %v800_v22 = vpop.f32.mrb[19].mxu1 }
 0x173   :  { %v570_v15 = vadd.f32 %v569_v24, %v2067_v4  ;;  %v801_v23 = vadd.f32 %v800_v22, %v2107_v18 }
 0x174   :  { %1020 = vst [vmem:[#allocation2 + $0xf0] sm:$0xff] %v568_v21  ;;  %995 = vst.msk [vmem:[#allocation2 + $0x28] sm:$0xff] %vm991_vm2, %v806_v54 }
 0x175   :  { %1021 = vst [vmem:[#allocation2 + $0xf8] sm:$0xff] %v570_v15  ;;  %992 = vst.msk [vmem:[#allocation2 + $0x10] sm:$0xff] %vm991_vm2, %v801_v23  ;;  %v573_v55 = vpop.f32.mrb[22].mxu0  ;;  %v1267_v25 = vpop.f32.mrb[20].mxu1 }
 0x176   :  { %v574_v2 = vadd.f32 %v573_v55, %v2064_v26  ;;  %v816_v27 = vadd.f32 %v1267_v25, %v2107_v18  ;;  %v575_v56 = vpop.f32.mrb[23].mxu0  ;;  %v810_v32 = vpop.f32.mrb[21].mxu1 }
 0x177   :  { %v576_v28 = vadd.f32 %v575_v56, %v2067_v4  ;;  %v811_v57 = vadd.f32 %v810_v32, %v2107_v18 }
 0x178   :  { %1023 = vst [vmem:[#allocation2 + $0x108] sm:$0xff] %v574_v2  ;;  %1001 = vst.msk [vmem:[#allocation2 + $0x58] sm:$0xff] %vm991_vm2, %v816_v27 }
 0x179   :  { %1024 = vst [vmem:[#allocation2 + $0x110] sm:$0xff] %v576_v28  ;;  %998 = vst.msk [vmem:[#allocation2 + $0x40] sm:$0xff] %vm991_vm2, %v811_v57  ;;  %v579_v33 = vpop.f32.mrb[24].mxu0  ;;  %v1270_v30 = vpop.f32.mrb[22].mxu1 }
 0x17a   :  { %v580_v58 = vadd.f32 %v579_v33, %v2064_v26  ;;  %v826_v3 = vadd.f32 %v1270_v30, %v2107_v18  ;;  %v581_v34 = vpop.f32.mrb[25].mxu0  ;;  %v820_v38 = vpop.f32.mrb[23].mxu1 }
 0x17b   :  { %v582_v59 = vadd.f32 %v581_v34, %v2067_v4  ;;  %v821_v60 = vadd.f32 %v820_v38, %v2107_v18 }
 0x17c   :  { %1026 = vst [vmem:[#allocation2 + $0x120] sm:$0xff] %v580_v58  ;;  %1007 = vst.msk [vmem:[#allocation2 + $0x88] sm:$0xff] %vm991_vm2, %v826_v3 }
 0x17d   :  { %1027 = vst [vmem:[#allocation2 + $0x128] sm:$0xff] %v582_v59  ;;  %1004 = vst.msk [vmem:[#allocation2 + $0x70] sm:$0xff] %vm991_vm2, %v821_v60  ;;  %v585_v39 = vpop.f32.mrb[26].mxu0  ;;  %v1273_v61 = vpop.f32.mrb[24].mxu1 }
 0x17e   :  { %v586_v5 = vadd.f32 %v585_v39, %v2064_v26  ;;  %v836_v37 = vadd.f32 %v1273_v61, %v2107_v18  ;;  %v587_v40 = vpop.f32.mrb[27].mxu0  ;;  %v830_v62 = vpop.f32.mrb[25].mxu1 }
 0x17f   :  { %v588_v44 = vadd.f32 %v587_v40, %v2067_v4  ;;  %v831_v63 = vadd.f32 %v830_v62, %v2107_v18 }
 0x180   :  { %1029 = vst [vmem:[#allocation2 + $0x138] sm:$0xff] %v586_v5  ;;  %1013 = vst.msk [vmem:[#allocation2 + $0xb8] sm:$0xff] %vm991_vm2, %v836_v37 }
 0x181   :  { %1030 = vst [vmem:[#allocation2 + $0x140] sm:$0xff] %v588_v44  ;;  %1010 = vst.msk [vmem:[#allocation2 + $0xa0] sm:$0xff] %vm991_vm2, %v831_v63  ;;  %v591_v45 = vpop.f32.mrb[28].mxu0  ;;  %v1276_v6 = vpop.f32.mrb[26].mxu1 }
 0x182   :  { %v592_v11 = vadd.f32 %v591_v45, %v2064_v26  ;;  %v846_v7 = vadd.f32 %v1276_v6, %v2107_v18  ;;  %v593_v12 = vpop.f32.mrb[29].mxu0  ;;  %v840_v46 = vpop.f32.mrb[27].mxu1 }
 0x183   :  { %v594_v47 = vadd.f32 %v593_v12, %v2067_v4  ;;  %v841_v49 = vadd.f32 %v840_v46, %v2107_v18 }
 0x184   :  { %1032 = vst [vmem:[#allocation2 + $0x150] sm:$0xff] %v592_v11  ;;  %1019 = vst.msk [vmem:[#allocation2 + $0xe8] sm:$0xff] %vm991_vm2, %v846_v7 }
 0x185   :  { %1033 = vst [vmem:[#allocation2 + $0x158] sm:$0xff] %v594_v47  ;;  %1016 = vst.msk [vmem:[#allocation2 + $0xd0] sm:$0xff] %vm991_vm2, %v841_v49  ;;  %v597_v13 = vpop.f32.mrb[30].mxu0  ;;  %v1279_v14 = vpop.f32.mrb[28].mxu1 }
 0x186   :  { %v598_v41 = vadd.f32 %v597_v13, %v2064_v26  ;;  %v856_v20 = vadd.f32 %v1279_v14, %v2107_v18  ;;  %v599_v29 = vpop.f32.mrb[31].mxu0  ;;  %v850_v35 = vpop.f32.mrb[29].mxu1 }
 0x187   :  { %v600_v42 = vadd.f32 %v599_v29, %v2067_v4  ;;  %v851_v48 = vadd.f32 %v850_v35, %v2107_v18 }
 0x188   :  { %1035 = vst [vmem:[#allocation2 + $0x168] sm:$0xff] %v598_v41  ;;  %1025 = vst.msk [vmem:[#allocation2 + $0x118] sm:$0xff] %vm991_vm2, %v856_v20 }
 0x189   :  { %1036 = vst [vmem:[#allocation2 + $0x170] sm:$0xff] %v600_v42  ;;  %1022 = vst.msk [vmem:[#allocation2 + $0x100] sm:$0xff] %vm991_vm2, %v851_v48  ;;  %v603_v8 = vpop.f32.mrb[32].mxu0  ;;  %v1282_v16 = vpop.f32.mrb[30].mxu1 }
 0x18a   :  { %v604_v50 = vadd.f32 %v603_v8, %v2064_v26  ;;  %v866_v0 = vadd.f32 %v1282_v16, %v2107_v18  ;;  %v605_v9 = vpop.f32.mrb[33].mxu0  ;;  %v860_v51 = vpop.f32.mrb[31].mxu1 }
 0x18b   :  { %v606_v31 = vadd.f32 %v605_v9, %v2067_v4  ;;  %v861_v36 = vadd.f32 %v860_v51, %v2107_v18 }
 0x18c   :  { %1038 = vst [vmem:[#allocation2 + $0x180] sm:$0xff] %v604_v50  ;;  %1031 = vst.msk [vmem:[#allocation2 + $0x148] sm:$0xff] %vm991_vm2, %v866_v0 }
 0x18d   :  { %1039 = vst [vmem:[#allocation2 + $0x188] sm:$0xff] %v606_v31  ;;  %1028 = vst.msk [vmem:[#allocation2 + $0x130] sm:$0xff] %vm991_vm2, %v861_v36  ;;  %v609_v52 = vpop.f32.mrb[34].mxu0  ;;  %v1285_v43 = vpop.f32.mrb[32].mxu1 }
 0x18e   :  { %v610_v17 = vadd.f32 %v609_v52, %v2064_v26  ;;  %v876_v1 = vadd.f32 %v1285_v43, %v2107_v18  ;;  %v611_v53 = vpop.f32.mrb[35].mxu0  ;;  %v870_v19 = vpop.f32.mrb[33].mxu1 }
 0x18f   :  { %v612_v10 = vadd.f32 %v611_v53, %v2067_v4  ;;  %v871_v21 = vadd.f32 %v870_v19, %v2107_v18 }
 0x190   :  { %1041 = vst [vmem:[#allocation2 + $0x198] sm:$0xff] %v610_v17  ;;  %1037 = vst.msk [vmem:[#allocation2 + $0x178] sm:$0xff] %vm991_vm2, %v876_v1 }
 0x191   :  { %1042 = vst [vmem:[#allocation2 + $0x1a0] sm:$0xff] %v612_v10  ;;  %1034 = vst.msk [vmem:[#allocation2 + $0x160] sm:$0xff] %vm991_vm2, %v871_v21  ;;  %v615_v54 = vpop.f32.mrb[36].mxu0  ;;  %v1288_v24 = vpop.f32.mrb[34].mxu1 }
 0x192   :  { %v616_v22 = vadd.f32 %v615_v54, %v2064_v26  ;;  %v886_v15 = vadd.f32 %v1288_v24, %v2107_v18  ;;  %v617_v23 = vpop.f32.mrb[37].mxu0  ;;  %v880_v55 = vpop.f32.mrb[35].mxu1 }
 0x193   :  { %v618_v25 = vadd.f32 %v617_v23, %v2067_v4  ;;  %v881_v2 = vadd.f32 %v880_v55, %v2107_v18 }
 0x194   :  { %1044 = vst [vmem:[#allocation2 + $0x1b0] sm:$0xff] %v616_v22  ;;  %1043 = vst.msk [vmem:[#allocation2 + $0x1a8] sm:$0xff] %vm991_vm2, %v886_v15 }
 0x195   :  { %1045 = vst [vmem:[#allocation2 + $0x1b8] sm:$0xff] %v618_v25  ;;  %1040 = vst.msk [vmem:[#allocation2 + $0x190] sm:$0xff] %vm991_vm2, %v881_v2  ;;  %v621_v27 = vpop.f32.mrb[38].mxu0  ;;  %v1291_v56 = vpop.f32.mrb[36].mxu1 }
 0x196   :  { %v622_v32 = vadd.f32 %v621_v27, %v2064_v26  ;;  %v896_v28 = vadd.f32 %v1291_v56, %v2107_v18  ;;  %v623_v57 = vpop.f32.mrb[39].mxu0  ;;  %v890_v33 = vpop.f32.mrb[37].mxu1 }
 0x197   :  { %v624_v30 = vadd.f32 %v623_v57, %v2067_v4  ;;  %v891_v58 = vadd.f32 %v890_v33, %v2107_v18 }
 0x198   :  { %1047 = vst [vmem:[#allocation2 + $0x1c8] sm:$0xff] %v622_v32  ;;  %1049 = vst.msk [vmem:[#allocation2 + $0x1d8] sm:$0xff] %vm991_vm2, %v896_v28 }
 0x199   :  { %1048 = vst [vmem:[#allocation2 + $0x1d0] sm:$0xff] %v624_v30  ;;  %1046 = vst.msk [vmem:[#allocation2 + $0x1c0] sm:$0xff] %vm991_vm2, %v891_v58  ;;  %v627_v3 = vpop.f32.mrb[40].mxu0  ;;  %v1294_v34 = vpop.f32.mrb[38].mxu1 }
 0x19a   :  { %v628_v38 = vadd.f32 %v627_v3, %v2064_v26  ;;  %v906_v59 = vadd.f32 %v1294_v34, %v2107_v18  ;;  %v629_v60 = vpop.f32.mrb[41].mxu0  ;;  %v900_v39 = vpop.f32.mrb[39].mxu1 }
 0x19b   :  { %v630_v61 = vadd.f32 %v629_v60, %v2067_v4  ;;  %v901_v5 = vadd.f32 %v900_v39, %v2107_v18 }
 0x19c   :  { %1050 = vst [vmem:[#allocation2 + $0x1e0] sm:$0xff] %v628_v38  ;;  %1055 = vst.msk [vmem:[#allocation2 + $0x208] sm:$0xff] %vm991_vm2, %v906_v59 }
 0x19d   :  { %1051 = vst [vmem:[#allocation2 + $0x1e8] sm:$0xff] %v630_v61  ;;  %1052 = vst.msk [vmem:[#allocation2 + $0x1f0] sm:$0xff] %vm991_vm2, %v901_v5  ;;  %v633_v37 = vpop.f32.mrb[42].mxu0  ;;  %v1297_v40 = vpop.f32.mrb[40].mxu1 }
 0x19e   :  { %v634_v62 = vadd.f32 %v633_v37, %v2064_v26  ;;  %v916_v44 = vadd.f32 %v1297_v40, %v2107_v18  ;;  %v635_v63 = vpop.f32.mrb[43].mxu0  ;;  %v910_v45 = vpop.f32.mrb[41].mxu1 }
 0x19f   :  { %v636_v6 = vadd.f32 %v635_v63, %v2067_v4  ;;  %v911_v11 = vadd.f32 %v910_v45, %v2107_v18 }
 0x1a0   :  { %1053 = vst [vmem:[#allocation2 + $0x1f8] sm:$0xff] %v634_v62  ;;  %1061 = vst.msk [vmem:[#allocation2 + $0x238] sm:$0xff] %vm991_vm2, %v916_v44 }
 0x1a1   :  { %1054 = vst [vmem:[#allocation2 + $0x200] sm:$0xff] %v636_v6  ;;  %1058 = vst.msk [vmem:[#allocation2 + $0x220] sm:$0xff] %vm991_vm2, %v911_v11  ;;  %v639_v7 = vpop.f32.mrb[44].mxu0  ;;  %v1300_v12 = vpop.f32.mrb[42].mxu1 }
 0x1a2   :  { %v640_v46 = vadd.f32 %v639_v7, %v2064_v26  ;;  %v926_v47 = vadd.f32 %v1300_v12, %v2107_v18  ;;  %v641_v49 = vpop.f32.mrb[45].mxu0  ;;  %v920_v13 = vpop.f32.mrb[43].mxu1 }
 0x1a3   :  { %v642_v14 = vadd.f32 %v641_v49, %v2067_v4  ;;  %v921_v41 = vadd.f32 %v920_v13, %v2107_v18 }
 0x1a4   :  { %1056 = vst [vmem:[#allocation2 + $0x210] sm:$0xff] %v640_v46  ;;  %1067 = vst.msk [vmem:[#allocation2 + $0x268] sm:$0xff] %vm991_vm2, %v926_v47 }
 0x1a5   :  { %1057 = vst [vmem:[#allocation2 + $0x218] sm:$0xff] %v642_v14  ;;  %1064 = vst.msk [vmem:[#allocation2 + $0x250] sm:$0xff] %vm991_vm2, %v921_v41  ;;  %v645_v20 = vpop.f32.mrb[46].mxu0  ;;  %v1303_v29 = vpop.f32.mrb[44].mxu1 }
 0x1a6   :  { %v646_v35 = vadd.f32 %v645_v20, %v2064_v26  ;;  %v936_v42 = vadd.f32 %v1303_v29, %v2107_v18  ;;  %v647_v48 = vpop.f32.mrb[47].mxu0  ;;  %v930_v8 = vpop.f32.mrb[45].mxu1 }
 0x1a7   :  { %v648_v16 = vadd.f32 %v647_v48, %v2067_v4  ;;  %v931_v50 = vadd.f32 %v930_v8, %v2107_v18 }
 0x1a8   :  { %1059 = vst [vmem:[#allocation2 + $0x228] sm:$0xff] %v646_v35  ;;  %1073 = vst.msk [vmem:[#allocation2 + $0x298] sm:$0xff] %vm991_vm2, %v936_v42 }
 0x1a9   :  { %1060 = vst [vmem:[#allocation2 + $0x230] sm:$0xff] %v648_v16  ;;  %1070 = vst.msk [vmem:[#allocation2 + $0x280] sm:$0xff] %vm991_vm2, %v931_v50  ;;  %v651_v0 = vpop.f32.mrb[48].mxu0  ;;  %v1306_v9 = vpop.f32.mrb[46].mxu1 }
 0x1aa   :  { %v652_v51 = vadd.f32 %v651_v0, %v2064_v26  ;;  %v946_v31 = vadd.f32 %v1306_v9, %v2107_v18  ;;  %v653_v36 = vpop.f32.mrb[49].mxu0  ;;  %v940_v52 = vpop.f32.mrb[47].mxu1 }
 0x1ab   :  { %v654_v43 = vadd.f32 %v653_v36, %v2067_v4  ;;  %v941_v17 = vadd.f32 %v940_v52, %v2107_v18 }
 0x1ac   :  { %1062 = vst [vmem:[#allocation2 + $0x240] sm:$0xff] %v652_v51  ;;  %1079 = vst.msk [vmem:[#allocation2 + $0x2c8] sm:$0xff] %vm991_vm2, %v946_v31 }
 0x1ad   :  { %1063 = vst [vmem:[#allocation2 + $0x248] sm:$0xff] %v654_v43  ;;  %1076 = vst.msk [vmem:[#allocation2 + $0x2b0] sm:$0xff] %vm991_vm2, %v941_v17  ;;  %v657_v1 = vpop.f32.mrb[50].mxu0  ;;  %v1309_v53 = vpop.f32.mrb[48].mxu1 }
 0x1ae   :  { %v658_v19 = vadd.f32 %v657_v1, %v2064_v26  ;;  %v956_v10 = vadd.f32 %v1309_v53, %v2107_v18  ;;  %v659_v21 = vpop.f32.mrb[51].mxu0  ;;  %v950_v54 = vpop.f32.mrb[49].mxu1 }
 0x1af   :  { %v660_v24 = vadd.f32 %v659_v21, %v2067_v4  ;;  %v951_v22 = vadd.f32 %v950_v54, %v2107_v18 }
 0x1b0   :  { %1065 = vst [vmem:[#allocation2 + $0x258] sm:$0xff] %v658_v19  ;;  %1085 = vst.msk [vmem:[#allocation2 + $0x2f8] sm:$0xff] %vm991_vm2, %v956_v10 }
 0x1b1   :  { %1066 = vst [vmem:[#allocation2 + $0x260] sm:$0xff] %v660_v24  ;;  %1082 = vst.msk [vmem:[#allocation2 + $0x2e0] sm:$0xff] %vm991_vm2, %v951_v22  ;;  %v663_v15 = vpop.f32.mrb[52].mxu0  ;;  %v1312_v23 = vpop.f32.mrb[50].mxu1 }
 0x1b2   :  { %v664_v55 = vadd.f32 %v663_v15, %v2064_v26  ;;  %v966_v25 = vadd.f32 %v1312_v23, %v2107_v18  ;;  %v665_v2 = vpop.f32.mrb[53].mxu0  ;;  %v960_v27 = vpop.f32.mrb[51].mxu1 }
 0x1b3   :  { %v666_v56 = vadd.f32 %v665_v2, %v2067_v4  ;;  %v961_v32 = vadd.f32 %v960_v27, %v2107_v18 }
 0x1b4   :  { %1068 = vst [vmem:[#allocation2 + $0x270] sm:$0xff] %v664_v55  ;;  %1091 = vst.msk [vmem:[#allocation2 + $0x328] sm:$0xff] %vm991_vm2, %v966_v25 }
 0x1b5   :  { %1069 = vst [vmem:[#allocation2 + $0x278] sm:$0xff] %v666_v56  ;;  %1088 = vst.msk [vmem:[#allocation2 + $0x310] sm:$0xff] %vm991_vm2, %v961_v32  ;;  %v669_v28 = vpop.f32.mrb[54].mxu0  ;;  %v1315_v57 = vpop.f32.mrb[52].mxu1 }
 0x1b6   :  { %v670_v33 = vadd.f32 %v669_v28, %v2064_v26  ;;  %v976_v30 = vadd.f32 %v1315_v57, %v2107_v18  ;;  %v671_v58 = vpop.f32.mrb[55].mxu0  ;;  %v970_v3 = vpop.f32.mrb[53].mxu1 }
 0x1b7   :  { %v672_v34 = vadd.f32 %v671_v58, %v2067_v4  ;;  %v971_v38 = vadd.f32 %v970_v3, %v2107_v18 }
 0x1b8   :  { %1071 = vst [vmem:[#allocation2 + $0x288] sm:$0xff] %v670_v33  ;;  %1097 = vst.msk [vmem:[#allocation2 + $0x358] sm:$0xff] %vm991_vm2, %v976_v30 }
 0x1b9   :  { %1072 = vst [vmem:[#allocation2 + $0x290] sm:$0xff] %v672_v34  ;;  %1094 = vst.msk [vmem:[#allocation2 + $0x340] sm:$0xff] %vm991_vm2, %v971_v38  ;;  %v675_v59 = vpop.f32.mrb[56].mxu0  ;;  %v1318_v60 = vpop.f32.mrb[54].mxu1 }
 0x1ba   :  { %v676_v39 = vadd.f32 %v675_v59, %v2064_v26  ;;  %v986_v61 = vadd.f32 %v1318_v60, %v2107_v18  ;;  %v677_v5 = vpop.f32.mrb[57].mxu0  ;;  %v980_v37 = vpop.f32.mrb[55].mxu1 }
 0x1bb   :  { %v678_v40 = vadd.f32 %v677_v5, %v2067_v4  ;;  %v981_v62 = vadd.f32 %v980_v37, %v2107_v18 }
 0x1bc   :  { %1074 = vst [vmem:[#allocation2 + $0x2a0] sm:$0xff] %v676_v39  ;;  %1104 = vst.msk [vmem:[#allocation2 + $0x388] sm:$0xf] %vm1103_vm3, %v986_v61 }
 0x1bd   :  { %1075 = vst [vmem:[#allocation2 + $0x2a8] sm:$0xff] %v678_v40  ;;  %1100 = vst.msk [vmem:[#allocation2 + $0x370] sm:$0xff] %vm991_vm2, %v981_v62 }
 0x1be   :  { %1377 = shalt.err (!%p1374_p4)
}
 0x1bf   :  { %s1378_s15 = scalar_lea.hbm %s2239_s3, 14592 }
 0x1c0   :  { %p1379_p5 = scmp.ne.s32.totalorder %s2239_s3, %s1378_s15  ;;  %p1382_p6 = scmp.lt.u32.totalorder %s1378_s15, %s2239_s3 }
 0x1c2   :  { %p1384_p7 = pnand %p1382_p6, %p1379_p5 }
 0x1c4   :  { %1387 = shalt.err (!%p1384_p7)
}
 0x1c5   :  { %s1393_s21 = smov 384   ;;  %s1394_s22 = smov 24  }
 0x1c6   :  { %1116 = dma.vmem_to_hbm [thread:$0]  %s1111_s11, 14592, %s2239_s3, [#allocation3], %s1393_s21, %s1393_s21, %s1394_s22  }
 0x1c7   :  { %1388 = dma.done.wait [#allocation3], 14592  }
 0x1c8   :  { %1389 = vsyncadd [#allocation3], 4294952704 }
 0x1c9   :  { %1120 = vsyncpa [#allocation3], 1 }

</bundles_post_ra>
